<compile_context>
chip_gen: v7x
topology: tpu7x:2x2x1
jax: 0.10.0
libtpu: 0.0.40
codegen_flags: <defaults>
</compile_context>

<pallas_src>
import functools

import numpy as np
import jax
import jax.numpy as jnp
from jax.experimental import pallas as pl
from jax.experimental.pallas import tpu as pltpu


def _round_up(x, m):
    return (x + m - 1) // m * m


# ----------------------------------------------------------------------------
# Pallas kernel: fused conv (one MXU matmul) + InstanceNorm + LeakyReLU
# ----------------------------------------------------------------------------
def _down_kernel(x_ref, w_ref, o_ref, *, offsets, lo_pad, lo, ow,
                 inv_count, eps, negative_slope):
    # x_ref : (4, Cin, LpP)  compute dtype -- 4 stride-2 phases of the padded
    #                        input, flattened row-major over (OH+1, OW+1).
    # w_ref : (Cout, 16*Cin) compute dtype -- all 16 taps repacked into one matrix.
    # o_ref : (Cout, Lo_pad) f32 -- row-padded, lane-dense flat NCHW output.

    # Build (16*Cin, Lo_pad) patch block from 16 statically-shifted flat slices
    # (pure lane shifts, no HBM im2col) and run ONE matmul with K = 16*Cin.
    patches = []
    for s in range(4):                       # phase (di, dj)
        xs = x_ref[s]                        # (Cin, LpP)
        for off in offsets:                  # tap shift (p, q)
            patches.append(xs[:, off:off + lo_pad])
    patch = jnp.concatenate(patches, axis=0)                # (16*Cin, Lo_pad)
    acc = jnp.dot(w_ref[...], patch,
                  preferred_element_type=jnp.float32)       # (Cout, Lo_pad) f32

    # In-kernel valid-column mask: the row-padded flat layout has 1 junk column
    # per output row plus tail padding up to Lo_pad.
    cols = jax.lax.broadcasted_iota(jnp.int32, (1, lo_pad), 1)
    valid = jnp.logical_and(cols < lo, (cols % (ow + 1)) < ow)
    m = valid.astype(jnp.float32)                            # (1, Lo_pad)

    # InstanceNorm2d: per-(n, channel) stats over valid positions only,
    # fused single pass, biased variance, eps=1e-5, no affine, f32 math.
    am = acc * m
    ssum = jnp.sum(am, axis=1, keepdims=True)                # (Cout, 1)
    ssq = jnp.sum(am * am, axis=1, keepdims=True)            # == sum(acc^2 * m)
    mean = ssum * inv_count
    var = jnp.maximum(ssq * inv_count - mean * mean, 0.0)
    yn = (acc - mean) * jax.lax.rsqrt(var + eps)

    # LeakyReLU(0.2) as a single max (slope < 1).
    o_ref[...] = jnp.maximum(yn, negative_slope * yn).astype(o_ref.dtype)


# ----------------------------------------------------------------------------
# VMEM limit: derived from hardware, with headroom for Mosaic scratch and
# double-buffered blocks (v7x: 64 MiB physical -> <= 48 MiB; v5e/v6e: 64 MiB).
# ----------------------------------------------------------------------------
def _pick_vmem_limit_bytes():
    cap = 128 * 1024 * 1024
    try:
        info_cap = int(pltpu.get_tpu_info().vmem_capacity_bytes)
        if info_cap > 0:
            cap = info_cap
    except Exception:
        pass
    return max(16 * 1024 * 1024, min(cap - 16 * 1024 * 1024, 64 * 1024 * 1024))


# ----------------------------------------------------------------------------
# Wrapper: glue (bf16 phase split, weight repack) + pallas_call
# ----------------------------------------------------------------------------
def unet_down_nobp(x_nchw, weight, *, negative_slope=0.2, eps=1e-5,
                   compute_dtype=jnp.bfloat16):
    """x: (N, Cin, H, W) f32, weight: (Cout, Cin, 4, 4) f32 (PyTorch Conv2d layout).
    Returns (N, Cout, H//2, W//2) f32, matching UNetDownNOBP.forward."""
    N, Cin, H, W = x_nchw.shape
    Cout = weight.shape[0]
    assert weight.shape == (Cout, Cin, 4, 4)
    assert H % 2 == 0 and W % 2 == 0
    OH, OW = H // 2, W // 2
    Lp = (OH + 1) * (OW + 1)              # flattened phase length (real data)
    Lo = OH * (OW + 1)                    # row-padded flat output length
    Lo_pad = _round_up(Lo, 128)           # lane-dense output width
    max_off = (OW + 1) + 1                # largest tap shift within a phase
    LpP = _round_up(max(Lp, Lo_pad + max_off), 128)   # padded phase width

    # Glue: cast to compute dtype FIRST so the pad / stride-2 phase split
    # (space-to-depth of the zero-padded input, ~1x input size) moves half
    # the HBM bytes. Each phase is (N, Cin, OH+1, OW+1).
    x = x_nchw.astype(compute_dtype)
    xp = jnp.pad(x, ((0, 0), (0, 0), (1, 1), (1, 1)))       # zero pad = 1
    phases = [xp[:, :, di::2, dj::2] for di in range(2) for dj in range(2)]
    x_ph = jnp.stack(phases, axis=1).reshape(N, 4, Cin, Lp)
    x_ph = jnp.pad(x_ph, ((0, 0), (0, 0), (0, 0), (0, LpP - Lp)))  # (N,4,Cin,LpP)

    # Weight repack: (Cout, 16*Cin); column blocks ordered (di, dj, p, q) to
    # match the in-kernel patch concatenation.
    w = weight.astype(jnp.float32)
    w_blocks = []
    for di in range(2):
        for dj in range(2):
            for p in range(2):
                for q in range(2):
                    w_blocks.append(w[:, :, 2 * p + di, 2 * q + dj])  # (Cout, Cin)
    w_all = jnp.concatenate(w_blocks, axis=1).astype(compute_dtype)   # (Cout, 16*Cin)

    # Flat offsets of the four (p, q) window shifts within a phase.
    offsets = tuple(p * (OW + 1) + q for p in range(2) for q in range(2))
    inv_count = 1.0 / float(OH * OW)

    kernel = functools.partial(
        _down_kernel, offsets=offsets, lo_pad=Lo_pad, lo=Lo, ow=OW,
        inv_count=inv_count, eps=eps, negative_slope=negative_slope)

    out_flat = pl.pallas_call(
        kernel,
        out_shape=jax.ShapeDtypeStruct((N, Cout, Lo_pad), jnp.float32),
        grid=(N,),
        in_specs=[
            pl.BlockSpec((None, 4, Cin, LpP), lambda n: (n, 0, 0, 0)),
            pl.BlockSpec((Cout, 16 * Cin), lambda n: (0, 0)),
        ],
        out_specs=pl.BlockSpec((None, Cout, Lo_pad), lambda n: (n, 0, 0)),
        compiler_params=pltpu.CompilerParams(
            dimension_semantics=("parallel",),
            vmem_limit_bytes=_pick_vmem_limit_bytes()),
    )(x_ph, w_all)

    # Strip lane padding + the junk column of each output row -> NCHW directly.
    out = out_flat[:, :, :Lo].reshape(N, Cout, OH, OW + 1)[:, :, :, :OW]
    return out


# ----------------------------------------------------------------------------
# Pure-JAX reference (for correctness check)
# ----------------------------------------------------------------------------
def reference(x, w, *, negative_slope=0.2, eps=1e-5):
    y = jax.lax.conv_general_dilated(
        x, w, window_strides=(2, 2), padding=((1, 1), (1, 1)),
        dimension_numbers=('NCHW', 'OIHW', 'NCHW'),
        precision=jax.lax.Precision.HIGHEST)
    mean = y.mean(axis=(2, 3), keepdims=True)
    var = ((y - mean) ** 2).mean(axis=(2, 3), keepdims=True)
    y = (y - mean) / jnp.sqrt(var + eps)
    return jnp.where(y >= 0, y, negative_slope * y)


if __name__ == "__main__":
    # Small shapes consistent with UNetDownNOBP(in_size=4, out_size=8).
    N, Cin, Cout, H, W = 2, 4, 8, 16, 16

    key = jax.random.PRNGKey(0)
    kx, kw = jax.random.split(key)
    x = jax.random.normal(kx, (N, Cin, H, W), dtype=jnp.float32)
    # Conv2d weight layout: (out_channels, in_channels, kH, kW)
    w = jax.random.normal(kw, (Cout, Cin, 4, 4), dtype=jnp.float32) * 0.1

    out = jax.block_until_ready(unet_down_nobp(x, w))
    assert out.shape == (N, Cout, H // 2, W // 2), out.shape

    # Tight logic check: reference run on the same bf16-quantized operands
    # (bf16 products are exact in f32; only accumulation order differs).
    xq = x.astype(jnp.bfloat16).astype(jnp.float32)
    wq = w.astype(jnp.bfloat16).astype(jnp.float32)
    ref_q = jax.block_until_ready(reference(xq, wq))
    np.testing.assert_allclose(np.asarray(out), np.asarray(ref_q),
                               rtol=1e-4, atol=1e-4)

    # End-to-end check vs pure-f32 reference; the only deviation is the bf16
    # quantization of the matmul operands (norm/activation math is f32).
    ref_f32 = jax.block_until_ready(reference(x, w))
    np.testing.assert_allclose(np.asarray(out), np.asarray(ref_f32),
                               rtol=3e-2, atol=3e-2)

    print("KERNEL_OK")
</pallas_src>

<mosaic_0001>
module attributes {stable_mosaic.version = 11 : i64} {
  func.func @_down_kernel(%arg0: i32, %arg1: memref<1x4x4x256xbf16, #tpu.memory_space<vmem>>, %arg2: memref<8x64xbf16, #tpu.memory_space<vmem>>, %arg3: memref<1x8x128xf32, #tpu.memory_space<vmem>>) attributes {dimension_semantics = [#tpu.dimension_semantics<parallel>], iteration_bounds = array<i64: 2>, scalar_prefetch = 0 : i64, scratch_operands = 0 : i64, tpu.core_type = #tpu.core_type<tc>, window_params = [{transform_indices = @transform_0, window_bounds = array<i64: 1, 4, 4, 256>}, {pipeline_mode = #tpu.pipeline_mode<synchronous>, transform_indices = @transform_1, window_bounds = array<i64: 8, 64>}, {transform_indices = @transform_2, window_bounds = array<i64: 1, 8, 128>}]} {
    %c0 = arith.constant 0 : index
    %c0_0 = arith.constant 0 : index
    %c0_1 = arith.constant 0 : index
    %c0_2 = arith.constant 0 : index
    %0 = vector.load %arg1[%c0, %c0_0, %c0_1, %c0_2] : memref<1x4x4x256xbf16, #tpu.memory_space<vmem>>, vector<1x1x4x256xbf16>
    %1 = vector.shape_cast %0 : vector<1x1x4x256xbf16> to vector<4x256xbf16>
    %2 = vector.extract_strided_slice %1 {offsets = [0, 0], sizes = [4, 128], strides = [1, 1]} : vector<4x256xbf16> to vector<4x128xbf16>
    %3 = vector.extract_strided_slice %1 {offsets = [0, 1], sizes = [4, 128], strides = [1, 1]} : vector<4x256xbf16> to vector<4x128xbf16>
    %4 = vector.extract_strided_slice %1 {offsets = [0, 9], sizes = [4, 128], strides = [1, 1]} : vector<4x256xbf16> to vector<4x128xbf16>
    %5 = vector.extract_strided_slice %1 {offsets = [0, 10], sizes = [4, 128], strides = [1, 1]} : vector<4x256xbf16> to vector<4x128xbf16>
    %c0_3 = arith.constant 0 : index
    %c1 = arith.constant 1 : index
    %c0_4 = arith.constant 0 : index
    %c0_5 = arith.constant 0 : index
    %6 = vector.load %arg1[%c0_3, %c1, %c0_4, %c0_5] : memref<1x4x4x256xbf16, #tpu.memory_space<vmem>>, vector<1x1x4x256xbf16>
    %7 = vector.shape_cast %6 : vector<1x1x4x256xbf16> to vector<4x256xbf16>
    %8 = vector.extract_strided_slice %7 {offsets = [0, 0], sizes = [4, 128], strides = [1, 1]} : vector<4x256xbf16> to vector<4x128xbf16>
    %9 = vector.extract_strided_slice %7 {offsets = [0, 1], sizes = [4, 128], strides = [1, 1]} : vector<4x256xbf16> to vector<4x128xbf16>
    %10 = vector.extract_strided_slice %7 {offsets = [0, 9], sizes = [4, 128], strides = [1, 1]} : vector<4x256xbf16> to vector<4x128xbf16>
    %11 = vector.extract_strided_slice %7 {offsets = [0, 10], sizes = [4, 128], strides = [1, 1]} : vector<4x256xbf16> to vector<4x128xbf16>
    %c0_6 = arith.constant 0 : index
    %c2 = arith.constant 2 : index
    %c0_7 = arith.constant 0 : index
    %c0_8 = arith.constant 0 : index
    %12 = vector.load %arg1[%c0_6, %c2, %c0_7, %c0_8] : memref<1x4x4x256xbf16, #tpu.memory_space<vmem>>, vector<1x1x4x256xbf16>
    %13 = vector.shape_cast %12 : vector<1x1x4x256xbf16> to vector<4x256xbf16>
    %14 = vector.extract_strided_slice %13 {offsets = [0, 0], sizes = [4, 128], strides = [1, 1]} : vector<4x256xbf16> to vector<4x128xbf16>
    %15 = vector.extract_strided_slice %13 {offsets = [0, 1], sizes = [4, 128], strides = [1, 1]} : vector<4x256xbf16> to vector<4x128xbf16>
    %16 = vector.extract_strided_slice %13 {offsets = [0, 9], sizes = [4, 128], strides = [1, 1]} : vector<4x256xbf16> to vector<4x128xbf16>
    %17 = vector.extract_strided_slice %13 {offsets = [0, 10], sizes = [4, 128], strides = [1, 1]} : vector<4x256xbf16> to vector<4x128xbf16>
    %c0_9 = arith.constant 0 : index
    %c3 = arith.constant 3 : index
    %c0_10 = arith.constant 0 : index
    %c0_11 = arith.constant 0 : index
    %18 = vector.load %arg1[%c0_9, %c3, %c0_10, %c0_11] : memref<1x4x4x256xbf16, #tpu.memory_space<vmem>>, vector<1x1x4x256xbf16>
    %19 = vector.shape_cast %18 : vector<1x1x4x256xbf16> to vector<4x256xbf16>
    %20 = vector.extract_strided_slice %19 {offsets = [0, 0], sizes = [4, 128], strides = [1, 1]} : vector<4x256xbf16> to vector<4x128xbf16>
    %21 = vector.extract_strided_slice %19 {offsets = [0, 1], sizes = [4, 128], strides = [1, 1]} : vector<4x256xbf16> to vector<4x128xbf16>
    %22 = vector.extract_strided_slice %19 {offsets = [0, 9], sizes = [4, 128], strides = [1, 1]} : vector<4x256xbf16> to vector<4x128xbf16>
    %23 = vector.extract_strided_slice %19 {offsets = [0, 10], sizes = [4, 128], strides = [1, 1]} : vector<4x256xbf16> to vector<4x128xbf16>
    %24 = tpu.concatenate %2, %3, %4, %5, %8, %9, %10, %11, %14, %15, %16, %17, %20, %21, %22, %23 in 0 : vector<4x128xbf16>, vector<4x128xbf16>, vector<4x128xbf16>, vector<4x128xbf16>, vector<4x128xbf16>, vector<4x128xbf16>, vector<4x128xbf16>, vector<4x128xbf16>, vector<4x128xbf16>, vector<4x128xbf16>, vector<4x128xbf16>, vector<4x128xbf16>, vector<4x128xbf16>, vector<4x128xbf16>, vector<4x128xbf16>, vector<4x128xbf16> -> vector<64x128xbf16>
    %c0_12 = arith.constant 0 : index
    %c0_13 = arith.constant 0 : index
    %25 = vector.load %arg2[%c0_12, %c0_13] : memref<8x64xbf16, #tpu.memory_space<vmem>>, vector<8x64xbf16>
    %cst = arith.constant dense<0.000000e+00> : vector<8x128xf32>
    %26 = tpu.matmul %25, %24, %cst {dimension_numbers = #tpu.dot_dimension_numbers<[1], [0], [0], [1], [0, 0, 1, 1], [], []>} : vector<8x64xbf16>, vector<64x128xbf16>, vector<8x128xf32> -> vector<8x128xf32>
    %27 = tpu.iota {dimensions = array<i32: 1>} : vector<1x128xi32>
    %c72_i32 = arith.constant 72 : i32
    %28 = vector.broadcast %c72_i32 : i32 to vector<1x128xi32>
    %29 = arith.cmpi slt, %27, %28 : vector<1x128xi32>
    %c9_i32 = arith.constant 9 : i32
    %c0_i32 = arith.constant 0 : i32
    %30 = arith.cmpi eq, %c9_i32, %c0_i32 : i32
    %c1_i32 = arith.constant 1 : i32
    %31 = arith.select %30, %c1_i32, %c9_i32 : i32
    %32 = vector.broadcast %31 : i32 to vector<1x128xi32>
    %33 = arith.remsi %27, %32 : vector<1x128xi32>
    %c0_i32_14 = arith.constant 0 : i32
    %34 = vector.broadcast %c0_i32_14 : i32 to vector<1x128xi32>
    %35 = arith.cmpi ne, %33, %34 : vector<1x128xi32>
    %c0_i32_15 = arith.constant 0 : i32
    %36 = vector.broadcast %c0_i32_15 : i32 to vector<1x128xi32>
    %37 = arith.cmpi slt, %33, %36 : vector<1x128xi32>
    %c0_i32_16 = arith.constant 0 : i32
    %38 = arith.cmpi slt, %31, %c0_i32_16 : i32
    %39 = vector.broadcast %38 : i1 to vector<1x128xi1>
    %40 = vector.broadcast %39 : vector<1x128xi1> to vector<1x128xi1>
    %41 = arith.xori %37, %40 : vector<1x128xi1>
    %42 = arith.andi %41, %35 : vector<1x128xi1>
    %43 = vector.broadcast %31 : i32 to vector<1x128xi32>
    %44 = arith.addi %33, %43 : vector<1x128xi32>
    %45 = arith.select %42, %44, %33 : vector<1x128xi1>, vector<1x128xi32>
    %c8_i32 = arith.constant 8 : i32
    %46 = vector.broadcast %c8_i32 : i32 to vector<1x128xi32>
    %47 = arith.cmpi slt, %45, %46 : vector<1x128xi32>
    %48 = arith.andi %29, %47 : vector<1x128xi1>
    %49 = arith.extui %48 : vector<1x128xi1> to vector<1x128xi32>
    %50 = arith.sitofp %49 : vector<1x128xi32> to vector<1x128xf32>
    %51 = vector.broadcast %50 : vector<1x128xf32> to vector<8x128xf32>
    %52 = arith.mulf %26, %51 : vector<8x128xf32>
    %cst_17 = arith.constant dense<0.000000e+00> : vector<8xf32>
    %53 = vector.multi_reduction <add>, %52, %cst_17 [1] : vector<8x128xf32> to vector<8xf32>
    %54 = vector.shape_cast %53 : vector<8xf32> to vector<8x1xf32>
    %55 = arith.mulf %52, %52 : vector<8x128xf32>
    %cst_18 = arith.constant dense<0.000000e+00> : vector<8xf32>
    %56 = vector.multi_reduction <add>, %55, %cst_18 [1] : vector<8x128xf32> to vector<8xf32>
    %57 = vector.shape_cast %56 : vector<8xf32> to vector<8x1xf32>
    %cst_19 = arith.constant 1.562500e-02 : f32
    %58 = vector.broadcast %cst_19 : f32 to vector<8x1xf32>
    %59 = arith.mulf %54, %58 : vector<8x1xf32>
    %cst_20 = arith.constant 1.562500e-02 : f32
    %60 = vector.broadcast %cst_20 : f32 to vector<8x1xf32>
    %61 = arith.mulf %57, %60 : vector<8x1xf32>
    %62 = arith.mulf %59, %59 : vector<8x1xf32>
    %63 = arith.subf %61, %62 : vector<8x1xf32>
    %cst_21 = arith.constant 0.000000e+00 : f32
    %64 = vector.broadcast %cst_21 : f32 to vector<8x1xf32>
    %65 = arith.maximumf %63, %64 : vector<8x1xf32>
    %66 = vector.broadcast %59 : vector<8x1xf32> to vector<8x128xf32>
    %67 = arith.subf %26, %66 : vector<8x128xf32>
    %cst_22 = arith.constant 9.99999974E-6 : f32
    %68 = vector.broadcast %cst_22 : f32 to vector<8x1xf32>
    %69 = arith.addf %65, %68 : vector<8x1xf32>
    %70 = math.rsqrt %69 : vector<8x1xf32>
    %71 = vector.broadcast %70 : vector<8x1xf32> to vector<8x128xf32>
    %72 = arith.mulf %67, %71 : vector<8x128xf32>
    %cst_23 = arith.constant 2.000000e-01 : f32
    %73 = vector.broadcast %cst_23 : f32 to vector<8x128xf32>
    %74 = arith.mulf %73, %72 : vector<8x128xf32>
    %75 = arith.maximumf %72, %74 : vector<8x128xf32>
    %c0_24 = arith.constant 0 : index
    %c0_25 = arith.constant 0 : index
    %c0_26 = arith.constant 0 : index
    %76 = vector.load %arg3[%c0_24, %c0_25, %c0_26] : memref<1x8x128xf32, #tpu.memory_space<vmem>>, vector<1x8x128xf32>
    %77 = vector.shape_cast %76 : vector<1x8x128xf32> to vector<8x128xf32>
    %78 = vector.shape_cast %75 : vector<8x128xf32> to vector<1x8x128xf32>
    tpu.vector_store %arg3[%c0_24, %c0_25, %c0_26], %78 {strides = array<i32>} : memref<1x8x128xf32, #tpu.memory_space<vmem>>, vector<1x8x128xf32>,
    return
  }
  func.func @transform_0(%arg0: i32) -> (i32, i32, i32, i32) {
    %c0_i32 = arith.constant 0 : i32
    %c0_i32_0 = arith.constant 0 : i32
    %c0_i32_1 = arith.constant 0 : i32
    %c0_i32_2 = arith.constant 0 : i32
    return %arg0, %c0_i32, %c0_i32_0, %c0_i32_1 : i32, i32, i32, i32
  }
  func.func @transform_1(%arg0: i32) -> (i32, i32) {
    %c0_i32 = arith.constant 0 : i32
    %c0_i32_0 = arith.constant 0 : i32
    %c0_i32_1 = arith.constant 0 : i32
    return %c0_i32, %c0_i32_0 : i32, i32
  }
  func.func @transform_2(%arg0: i32) -> (i32, i32, i32) {
    %c0_i32 = arith.constant 0 : i32
    %c0_i32_0 = arith.constant 0 : i32
    %c0_i32_1 = arith.constant 0 : i32
    return %arg0, %c0_i32, %c0_i32_0 : i32, i32, i32
  }
}

</mosaic_0001>

<bundles_post_ra>
// kernel: tpu_custom_call.1
= control target key start
LH: loop header
LB: loop body
LE: loop exit
PB: predicated region body
PF: predicated region fallthrough
CT: control target
= control target key end

     0   :  { %7 = vsyncpa [#allocation3], 0  ;;  %s1091_s0 = inlined_call_operand.hbm [shape: bf16[2,4,4,256], index: 0, kind: input, shape index: {}]   ;;  %s1092_s1 = inlined_call_operand.hbm [shape: bf16[8,64], index: 1, kind: input, shape index: {}]   ;;  %s1093_s2 = inlined_call_operand.hbm [shape: f32[2,8,128], index: 2, kind: output, shape index: {}]  }
   0x1   :  { %9 = vsyncpa [#allocation3 + $0x1], 0 }
   0x2   :  { %10 = vsyncpa [#allocation6], 0 }
   0x3   :  { %11 = vsyncpa [#allocation4], 0 }
   0x4   :  { %13 = vsyncpa [#allocation4 + $0x1], 0  ;;  %s804_s9 = smov 0   ;;  %s806_s10 = smov 0  }
   0x5   :  { %s808_s11 = smov 0   ;;  %s810_s12 = smov 0  }
   0x6 LB: > { %s825_s13 = sadd.s32 4294967295, %s776_s12   ;;  %s537_s14 = sadd.s32 4294967294, %s776_s12   ;;  %s776_s12 = sphi %s810_s12, %s1118_s12   ;;  %s772_s11 = sphi %s808_s11, %s1117_s11   ;;  %s768_s10 = sphi %s806_s10, %s1116_s10   ;;  %s764_s9 = sphi %s804_s9, %s1115_s9  }
   0x7   : > { %s829_s15 = sadd.s32 1, %s776_s12   ;;  %s26_s16 = sadd.s32 1, %s772_s11 }
   0x8   : > { %s23_s17 = ssub.s32 %s776_s12, %s829_s15  ;;  %p33_p0 = scmp.ne.s32.totalorder %s772_s11, %s768_s10 }
   0x9   : > { %p24_p1 = scmp.eq.s32.totalorder %s23_s17, 0  ;;  %p34_p2 = scmp.eq.s32.totalorder %s776_s12, 0 }
   0xa   : > { %p39_p3 = scmp.ne.s32.totalorder %s768_s10, %s764_s9  ;;  %p1094_p4 = scmp.eq.s32.totalorder %s825_s13, 0 }
   0xb   : > { %s841_s18 = scalar_select %p24_p1, %s772_s11, %s26_s16  }
   0xc   : > { %p843_p5 = por %p34_p2, %p33_p0  ;;  %p849_p6 = por %p1094_p4, %p39_p3 }
   0xd   : > { %p84_p7 = scmp.eq.s32.totalorder %s825_s13, 1  ;;  %p90_p8 = scmp.eq.s32.totalorder %s537_s14, 1 }
   0xe   : > { %s1100_s20 = scalar_select %p849_p6, 1, 0 }
   0xf   : > { %p538_p9 = scmp.ge.s32.totalorder %s776_s12, 1  ;;  %p97_p10 = scmp.lt.s32.totalorder %s776_s12, 3 }
  0x10   : > { %p856_p11 = por %p84_p7, %p33_p0  ;;  %p860_p12 = por %p90_p8, %p39_p3 }
  0x11   : > { %p864_p13 = pnand %p538_p9, %p97_p10  ;;  %s778_s24 = smov [#allocation5]  }
  0x12   : > { %s1101_s21 = scalar_select %p856_p11, 1, 0 }
  0x13   : > { %s1102_s22 = scalar_select %p860_p12, 1, 0 }
  0x14   : > { %s1103_s23 = scalar_select %p864_p13, 1, 0 }
  0x15   : > { %p585_p2 = pneg %p864_p13  ;;  %s110_s25 = sshll.u32 %s778_s24, 4  ;;  %s111_s25 = int_to_ptr.vmem [resolvable:$true] %s110_s25 }
  0x16   : > { %p598_p4 = scmp.lt.s32.totalorder %s776_s12, 2  ;;  %p1104_p0 = scmp.eq.s32.totalorder %s825_s13, 0 }
  0x17   : > { %s121_s27 = sand.u32 1, %s772_s11   ;;  %s648_s4 = scalar_lea.hbm %s1092_s1, 64 }
  0x18   : > { %p874_p7 = pnand %p585_p2, %p1104_p0  ;;  %p881_p3 = pnand %p598_p4, %p843_p5 }
  0x19   : > { %s541_s29 = sshll.u32 %s121_s27, 4  ;;  %p649_p8 = scmp.ne.s32.totalorder %s1092_s1, %s648_s4 }
  0x1a   : > { %s1106_s28 = scalar_select %p881_p3, 1, 0 }
  0x1b   : > { %p650_p9 = pneg %p874_p7  ;;  %p655_p4 = scmp.lt.u32.totalorder %s648_s4, %s1092_s1 }
  0x1d   : > { %p651_p10 = pnand %p650_p9, %p649_p8 }
  0x1f   : > { %p652_p2 = pneg %p651_p10 }
  0x21   : > { %p657_p5 = pnand %p655_p4, %p652_p2 }
  0x23   : > { %660 = shalt.err (!%p657_p5)
}
  0x24   : > { %s661_s14 = scalar_lea.vmem %s111_s25, 64  ;;  %p669_p11 = scmp.lt.s32.totalorder %s111_s25, %s111_s25 }
  0x25   : > { %p662_p0 = scmp.ne.s32.totalorder %s111_s25, %s661_s14  ;;  %p670_p6 = scmp.lt.s32.totalorder %s661_s14, %s661_s14 }
  0x27   : > { %p664_p1 = pnand %p662_p0, %p650_p9  ;;  %p671_p13 = por %p670_p6, %p669_p11 }
  0x29   : > { %p665_p12 = pneg %p664_p1 }
  0x2b   : > { %p672_p3 = pnand %p671_p13, %p665_p12 }
  0x2d   : > { %675 = shalt.err (!%p672_p3)
}
  0x2e   : > { %588 = dma.hbm_to_vmem [thread:$0]  (!%p874_p7), %s1092_s1, 64, %s111_s25, [#allocation6]  }
  0x2f   : > { %s557_s19 = sshll.u32 %s776_s12, 8  ;;  %s125_s24 = scalar_lea.vmem [#allocation2], %s541_s29 }
  0x30   : > { %s132_s30 = sshll.u32 %s125_s24, 4  ;;  %s905_s5 = scalar_lea.hbm %s1091_s0, %s557_s19  ;;  %s907_s30 = int_to_ptr.vmem [resolvable:$true] %s132_s30 }
  0x31   : > { %s909_s26 = scalar_lea.sflag [#allocation3], %s121_s27  ;;  %s676_s6 = scalar_lea.hbm %s905_s5, 256 }
  0x32   : > { %p677_p6 = scmp.ne.s32.totalorder %s905_s5, %s676_s6  ;;  %p1107_p11 = scmp.ne.s32.totalorder %s1106_s28, 0 }
  0x33   : > { %s681_s7 = scalar_lea.hbm %s1091_s0, 512  ;;  %p682_p7 = scmp.lt.u32.totalorder %s905_s5, %s1091_s0 }
  0x34   : > { %p678_p12 = pneg %p1107_p11  ;;  %p683_p3 = scmp.lt.u32.totalorder %s681_s7, %s676_s6 }
  0x35   : > { %p685_p9 = scmp.lt.u32.totalorder %s676_s6, %s905_s5 }
  0x36   : > { %p679_p13 = pnand %p678_p12, %p677_p6  ;;  %p684_p8 = por %p683_p3, %p682_p7 }
  0x38   : > { %p680_p1 = pneg %p679_p13  ;;  %p686_p10 = por %p685_p9, %p684_p8 }
  0x3a   : > { %p687_p2 = pnand %p686_p10, %p680_p1 }
  0x3c   : > { %690 = shalt.err (!%p687_p2)
}
  0x3d   : > { %s691_s27 = scalar_lea.vmem %s907_s30, 256  ;;  %s779_s16 = smov [#allocation2]  }
  0x3e   : > { %p692_p4 = scmp.ne.s32.totalorder %s907_s30, %s691_s27  ;;  %s696_s17 = sshll.u32 %s779_s16, 4  ;;  %s697_s17 = int_to_ptr.vmem [resolvable:$false] %s696_s17 }
  0x3f   : > { %s698_s19 = scalar_lea.vmem %s697_s17, 512  ;;  %p699_p6 = scmp.lt.s32.totalorder %s907_s30, %s697_s17 }
  0x40   : > { %p694_p5 = pnand %p692_p4, %p678_p12  ;;  %p700_p13 = scmp.lt.s32.totalorder %s698_s19, %s691_s27 }
  0x42   : > { %p695_p0 = pneg %p694_p5  ;;  %p701_p7 = por %p700_p13, %p699_p6 }
  0x44   : > { %p702_p3 = pnand %p701_p7, %p695_p0 }
  0x46   : > { %705 = shalt.err (!%p702_p3)
}
  0x47   : > { %s780_s24 = smov 64   ;;  %s781_s3 = smov 4  }
  0x48   : > { %592 = dma.hbm_to_vmem [thread:$0]  (!%p1107_p11), %s905_s5, 256, %s907_s30, %s909_s26, %s780_s24, %s780_s24, %s781_s3  }
  0x49   : > { %p1108_p12 = scmp.ne.s32.totalorder %s1103_s23, 0 }
  0x4a   : > { %s940_s4 = sand.u32 (!%p1108_p12), 1, %s768_s10   ;;  %p1109_p1 = scmp.ne.s32.totalorder (!%p1108_p12), %s1100_s20, 0 }
  0x4b   : > { %144 = sbr.rel (%p1108_p12) target bundleno = 656 (0x290), region = 28  ;;  %s545_s6 = sshll.u32 (!%p1108_p12), %s940_s4, 4 }
  0x4c   : > { %s147_s25 = scalar_lea.sflag (!%p1108_p12), [#allocation3], %s940_s4  ;;  %s944_s29 = scalar_lea.vmem (!%p1108_p12), [#allocation2], %s545_s6 }
  0x52   : > { %751 = dma.done.wait (%p1109_p1), %s147_s25, 256  }
  0x53   : > { %753 = vsyncadd (%p1109_p1), %s147_s25, 4294967040  ;;  %p1110_p11 = scmp.eq.s32.totalorder %s825_s13, 0 }
  0x55   : > { %755 = dma.done.wait (%p1110_p11), [#allocation6], 64   ;;  %p1111_p8 = pmov %p1110_p11 }
  0x56   : > { %v188_v0 = vlaneseq  ;;  %v782_v1 = vmov 1983009808   ;;  %v956_v6 = vld [vmem:[%s944_s29] sm:$0xf]  ;;  %v959_v7 = vld [vmem:[%s944_s29 + $0x4] sm:$0xf] }
  0x57   : > { %757 = vsyncadd (%p1111_p8), [#allocation6], 4294967232  ;;  %v186_v2 = vunpack.c.l.s4 %v782_v1  ;;  %v184_v9 = vcombine.low %v956_v6, %v956_v6  ;;  %v221_v10 = vcombine.low %v959_v7, %v959_v7  ;;  %s783_s20 = smov 119   ;;  %s784_s23 = smov 127   ;;  %v785_v14 = vmov 0.0  }
  0x58   : > { %v189_v3 = vshrl.u32 %v188_v0, 7  ;;  %563 = vmatprep.subr.bf16.mxu0 %v785_v14  ;;  %s786_s28 = smov 118   ;;  %v973_v17 = vld [vmem:[%s944_s29 + $0x8] sm:$0xf]  ;;  %v985_v25 = vld [vmem:[%s944_s29 + $0xc] sm:$0xf] }
  0x59   : > { %v187_v4 = vunpack.c.0.s8 %v186_v2  ;;  %v255_v20 = vcombine.low %v973_v17, %v973_v17  ;;  %v289_v27 = vcombine.low %v985_v25, %v985_v25  ;;  %vm787_vm0 = vmmov 0   ;;  %s547_s30 = sshll.u32 %s940_s4, 3  ;;  %s554_s5 = sshll.u32 %s825_s13, 7 }
  0x5a   : > { %571 = vmatprep.mubr.msk.bf16.mxu0 %vm787_vm0, %v785_v14  ;;  %vm204_vm1 = vcmask 1039360   ;;  %vm322_vm2 = vcmask 1041408   ;;  %vm211_vm3 = vcmask 973824   ;;  %vm218_vm4 = vcmask 965632   ;;  %s174_s26 = scalar_lea.vmem [#allocation7], %s547_s30  ;;  %s1047_s27 = scalar_lea.hbm %s1093_s2, %s554_s5 }
  0x5b   : > { %v190_v5 = vsub.s32 %v187_v4, %v189_v3  ;;  %vm326_vm5 = vcmask 1043456   ;;  %vm329_vm6 = vcmask 1045504   ;;  %vm358_vm7 = vcmask 523264   ;;  %s457_s7 = sshll.u32 %s174_s26, 4  ;;  %s444_s16 = scalar_lea.sflag [#allocation4], %s940_s4  ;;  %s1049_s7 = int_to_ptr.vmem [resolvable:$true] %s457_s7 }
  0x5c   : > { %s706_s17 = scalar_lea.vmem %s1049_s7, 128  ;;  %p1112_p10 = scmp.ne.s32.totalorder %s1101_s21, 0 }
  0x5d   : > { %v198_v8 = vrot.slane %v956_v6, %v190_v5  ;;  %v191_v12 = vrot.slane %v184_v9, %v190_v5  ;;  %v228_v13 = vrot.slane %v221_v10, %v190_v5  ;;  %v235_v19 = vrot.slane %v959_v7, %v190_v5  ;;  %p707_p9 = scmp.ne.s32.totalorder %s1049_s7, %s706_s17  ;;  %s788_s13 = smov [#allocation7]  }
  0x5e   : > { %v262_v22 = vrot.slane %v255_v20, %v190_v5  ;;  %v269_v26 = vrot.slane %v973_v17, %v190_v5  ;;  %v296_v29 = vrot.slane %v289_v27, %v190_v5  ;;  %v303_v32 = vrot.slane %v985_v25, %v190_v5  ;;  %s710_s19 = sshll.u32 %s788_s13, 4  ;;  %s711_s19 = int_to_ptr.vmem [resolvable:$false] %s710_s19 }
  0x5f   : > { %209 = vrot.lane.b32.xlu1 %v198_v8, %s783_s20  ;;  %v206_v11 = vcombine.low %v198_v8, %v198_v8  ;;  %200 = vrot.lane.b32.xlu0 %v191_v12, %s784_s23  ;;  %v199_v15 = vcombine.high %v191_v12, %v191_v12  ;;  %v236_v16 = vcombine.high %v228_v13, %v228_v13  ;;  %p708_p2 = pnand %p707_p9, %p1112_p10  ;;  %s712_s24 = scalar_lea.vmem %s711_s19, 256 }
  0x60   : > { %v213_v18 = vcombine.low %v191_v12, %v191_v12  ;;  %v242_v21 = vcombine.low %v235_v19, %v235_v19  ;;  %v248_v23 = vcombine.low %v228_v13, %v228_v13  ;;  %v270_v24 = vcombine.high %v262_v22, %v262_v22  ;;  %p713_p5 = scmp.lt.s32.totalorder %s1049_s7, %s711_s19  ;;  %p714_p0 = scmp.lt.s32.totalorder %s712_s24, %s706_s17 }
  0x61   : > { %v276_v28 = vcombine.low %v269_v26, %v269_v26  ;;  %v282_v30 = vcombine.low %v262_v22, %v262_v22  ;;  %v304_v31 = vcombine.high %v296_v29, %v296_v29  ;;  %v310_v33 = vcombine.low %v303_v32, %v303_v32  ;;  %p709_p4 = pneg %p708_p2 }
  0x62   : > { %v316_v34 = vcombine.low %v296_v29, %v296_v29  ;;  %p715_p6 = por %p714_p0, %p713_p5 }
  0x63   : > { %207 = vrot.lane.b32.xlu1 %v206_v11, %s783_s20  ;;  %237 = vrot.lane.b32.xlu0 %v228_v13, %s784_s23 }
  0x64   : > { %p716_p13 = pnand %p715_p6, %p709_p4 }
  0x67   : > { %216 = vrot.lane.b32.xlu1 %v191_v12, %s786_s28  ;;  %202 = vrot.lane.b32.xlu0 %v199_v15, %s784_s23 }
  0x6b   : > { %239 = vrot.lane.b32.xlu1 %v236_v16, %s784_s23  ;;  %214 = vrot.lane.b32.xlu0 %v213_v18, %s786_s28 }
  0x6f   : > { %245 = vrot.lane.b32.xlu1 %v235_v19, %s783_s20  ;;  %243 = vrot.lane.b32.xlu0 %v242_v21, %s783_s20  ;;  %v357_v21 = vld [vmem:[#allocation5] sm:$0xf] }
  0x73   : > { %251 = vrot.lane.b32.xlu1 %v228_v13, %s786_s28  ;;  %249 = vrot.lane.b32.xlu0 %v248_v23, %s786_s28 }
  0x77   : > { %273 = vrot.lane.b32.xlu1 %v270_v24, %s784_s23  ;;  %271 = vrot.lane.b32.xlu0 %v262_v22, %s784_s23 }
  0x7b   : > { %279 = vrot.lane.b32.xlu1 %v269_v26, %s783_s20  ;;  %277 = vrot.lane.b32.xlu0 %v276_v28, %s783_s20 }
  0x7f   : > { %285 = vrot.lane.b32.xlu1 %v262_v22, %s786_s28  ;;  %283 = vrot.lane.b32.xlu0 %v282_v30, %s786_s28  ;;  %v403_v22 = vand.u32 127, %v188_v0 }
  0x81   : > { %v1037_v23 = vmul.u32.u64.low 3817748708, %v403_v22  ;;  %v1038_v24 = vmul.u32.u64.high 3817748708, %v403_v22, %v1037_v23  ;;  %vm404_vm11 = vcmp.lt.s32.totalorder %v403_v22, 72 }
  0x83   : > { %307 = vrot.lane.b32.xlu1 %v304_v31, %s784_s23  ;;  %305 = vrot.lane.b32.xlu0 %v296_v29, %s784_s23  ;;  %v411_v26 = vshrl.u32 %v1038_v24, 3 }
  0x85   : > { %v412_v27 = vmul.u32 9, %v411_v26 }
  0x87   : > { %313 = vrot.lane.b32.xlu1 %v303_v32, %s783_s20  ;;  %311 = vrot.lane.b32.xlu0 %v310_v33, %s783_s20 }
  0x8b   : > { %319 = vrot.lane.b32.xlu1 %v296_v29, %s786_s28  ;;  %317 = vrot.lane.b32.xlu0 %v316_v34, %s786_s28 }
  0xd1   : > { %v210_v35 = vpop.permute.xlu1 %209  ;;  %v201_v36 = vpop.permute.xlu0 %200 }
  0xd5   : > { %v208_v37 = vpop.permute.xlu1 %207  ;;  %v238_v38 = vpop.permute.xlu0 %237 }
  0xd6   : > { %v212_v44 = vsel %vm211_vm3, %v208_v37, %v210_v35 }
  0xd9   : > { %v217_v39 = vpop.permute.xlu1 %216  ;;  %v203_v40 = vpop.permute.xlu0 %202 }
  0xda   : > { %v205_v41 = vsel %vm204_vm1, %v201_v36, %v203_v40 }
  0xdb   : > { %v325_v42 = vsel %vm322_vm2, %v956_v6, %v205_v41 }
  0xdc   : > { %v328_v47 = vsel %vm326_vm5, %v325_v42, %v212_v44 }
  0xdd   : > { %v240_v43 = vpop.permute.xlu1 %239  ;;  %v215_v45 = vpop.permute.xlu0 %214 }
  0xde   : > { %v219_v46 = vsel %vm218_vm4, %v215_v45, %v217_v39  ;;  %v241_v51 = vsel %vm204_vm1, %v238_v38, %v240_v43 }
  0xdf   : > { %v331_v48 = vsel %vm329_vm6, %v328_v47, %v219_v46  ;;  %v335_v54 = vsel %vm322_vm2, %v959_v7, %v241_v51 }
  0xe0   : > { %564 = vmatpush3.bf16.msra.mxu0 %v331_v48 }
  0xe1   : > { %v246_v49 = vpop.permute.xlu1 %245  ;;  %v244_v50 = vpop.permute.xlu0 %243  ;;  %565 = vmatprep.subr.bf16.mxu0 %v785_v14 }
  0xe2   : > { %v247_v52 = vsel %vm211_vm3, %v244_v50, %v246_v49 }
  0xe3   : > { %v337_v57 = vsel %vm326_vm5, %v335_v54, %v247_v52 }
  0xe5   : > { %v252_v53 = vpop.permute.xlu1 %251  ;;  %v250_v55 = vpop.permute.xlu0 %249 }
  0xe6   : > { %v253_v56 = vsel %vm218_vm4, %v250_v55, %v252_v53 }
  0xe7   : > { %v339_v58 = vsel %vm329_vm6, %v337_v57, %v253_v56 }
  0xe8   : > { %566 = vmatpush3.bf16.msra.mxu0 %v339_v58 }
  0xe9   : > { %v274_v59 = vpop.permute.xlu1 %273  ;;  %v272_v60 = vpop.permute.xlu0 %271  ;;  %567 = vmatprep.subr.bf16.mxu0 %v785_v14 }
  0xea   : > { %v275_v63 = vsel %vm204_vm1, %v272_v60, %v274_v59 }
  0xeb   : > { %v343_v3 = vsel %vm322_vm2, %v973_v17, %v275_v63 }
  0xed   : > { %v280_v61 = vpop.permute.xlu1 %279  ;;  %v278_v62 = vpop.permute.xlu0 %277 }
  0xee   : > { %v281_v1 = vsel %vm211_vm3, %v278_v62, %v280_v61 }
  0xef   : > { %v345_v6 = vsel %vm326_vm5, %v343_v3, %v281_v1 }
  0xf1   : > { %v286_v2 = vpop.permute.xlu1 %285  ;;  %v284_v4 = vpop.permute.xlu0 %283 }
  0xf2   : > { %v287_v5 = vsel %vm218_vm4, %v284_v4, %v286_v2 }
  0xf3   : > { %v347_v7 = vsel %vm329_vm6, %v345_v6, %v287_v5 }
  0xf4   : > { %568 = vmatpush3.bf16.msra.mxu0 %v347_v7 }
  0xf5   : > { %v308_v8 = vpop.permute.xlu1 %307  ;;  %v306_v9 = vpop.permute.xlu0 %305  ;;  %569 = vmatprep.subr.bf16.mxu0 %v785_v14 }
  0xf6   : > { %v309_v12 = vsel %vm204_vm1, %v306_v9, %v308_v8 }
  0xf7   : > { %v351_v16 = vsel %vm322_vm2, %v985_v25, %v309_v12  ;;  %v413_v25 = vsub.s32 %v403_v22, %v412_v27 }
  0xf9   : > { %v314_v10 = vpop.permute.xlu1 %313  ;;  %v312_v11 = vpop.permute.xlu0 %311  ;;  %vm416_vm8 = vcmp.ne.s32.totalorder %v413_v25, 0  ;;  %vm417_vm9 = vcmp.lt.s32.totalorder %v413_v25, 0  ;;  %v419_v28 = vadd.s32 9, %v413_v25 }
  0xfa   : > { %v315_v13 = vsel %vm211_vm3, %v312_v11, %v314_v10  ;;  %vm418_vm10 = vmand %vm417_vm9, %vm416_vm8 }
  0xfb   : > { %v353_v19 = vsel %vm326_vm5, %v351_v16, %v315_v13  ;;  %v420_v29 = vsel %vm418_vm10, %v419_v28, %v413_v25 }
  0xfc   : > { %vm421_vm12 = vcmp.lt.s32.totalorder %v420_v29, 8 }
  0xfd   : > { %v320_v15 = vpop.permute.xlu1 %319  ;;  %v318_v17 = vpop.permute.xlu0 %317  ;;  %vm422_vm13 = vmand %vm404_vm11, %vm421_vm12 }
  0xfe   : > { %v321_v18 = vsel %vm218_vm4, %v318_v17, %v320_v15  ;;  %v552_v30 = vsel %vm422_vm13, 1.0, %v785_v14 }
  0xff   : > { %v355_v20 = vsel %vm329_vm6, %v353_v19, %v321_v18 }
 0x100   : > { %570 = vmatpush3.bf16.msra.mxu0 %v355_v20 }
 0x103   : > { %572 = vmatmul.mubr.msk.bf16.vlgmr.msra.gmra.mrb[0].mxu0 %vm358_vm7, %v357_v21 }
 0x1d6   : > { %v396_v31 = vpop.f32.mrb[0].mxu0 }
 0x1d7   : > { %v573_v32 = vpop.f32.mrb[1].mxu0  ;;  %v425_v0 = vmul.f32 %v552_v30, %v396_v31 }
 0x1d8   : > { %v399_v33 = vpop.f32.mrb[2].mxu0 }
 0x1d9   : > { %426 = vadd.xlane.f32.xlu0 %v425_v0  ;;  %v574_v34 = vpop.f32.mrb[3].mxu0  ;;  %v428_v35 = vmul.f32 %v425_v0, %v425_v0 }
 0x1db   : > { %429 = vadd.xlane.f32.xlu1 %v428_v35 }
 0x266   : > { %v427_v36 = vpop.xlane.xlu0 %426 }
 0x267   : > { %v431_v37 = vmul.f32 0.015625, %v427_v36 }
 0x268   : > { %v430_v38 = vpop.xlane.xlu1 %429 }
 0x269   : > { %v433_v39 = vmul.f32 %v431_v37, %v431_v37  ;;  %v432_v40 = vmul.f32 0.015625, %v430_v38  ;;  %v436_v14 = vsub.f32 %v396_v31, %v431_v37 }
 0x26b   : > { %v434_v41 = vsub.f32 %v432_v40, %v433_v39 }
 0x26d   : > { %v435_v42 = vmax.f32 %v434_v41, 0.0 }
 0x26f   : > { %v437_v43 = vadd.f32 1e-05, %v435_v42 }
 0x271   : > { %646 = vrsqrt.f32 %v437_v43 }
 0x27b   : > { %v647_v44 = vpop.eup %646 }
 0x27c   : > { %v439_v45 = vmul.f32 %v647_v44, %v436_v14 }
 0x27e   : > { %v440_v46 = vmul.f32 0.2, %v439_v45 }
 0x280   : > { %v441_v47 = vmax.f32 %v439_v45, %v440_v46 }
 0x282   : > { %442 = vst [vmem:[%s174_s26] sm:$0xff] %v441_v47 }
 0x283   : > { %719 = shalt.err (!%p716_p13)
}
 0x284   : > { %s720_s3 = scalar_lea.hbm %s1047_s27, 128  ;;  %s724_s25 = scalar_lea.hbm %s1093_s2, 256 }
 0x285   : > { %p721_p7 = scmp.ne.s32.totalorder %s1047_s27, %s720_s3  ;;  %p725_p1 = scmp.lt.u32.totalorder %s1047_s27, %s1093_s2 }
 0x286   : > { %p726_p11 = scmp.lt.u32.totalorder %s724_s25, %s720_s3  ;;  %p728_p9 = scmp.lt.u32.totalorder %s720_s3, %s1047_s27 }
 0x287   : > { %p722_p3 = pnand %p721_p7, %p1112_p10 }
 0x288   : > { %p727_p8 = por %p726_p11, %p725_p1 }
 0x289   : > { %p723_p12 = pneg %p722_p3 }
 0x28a   : > { %p729_p2 = por %p728_p9, %p727_p8 }
 0x28c   : > { %p730_p4 = pnand %p729_p2, %p723_p12 }
 0x28e   : > { %733 = shalt.err (!%p730_p4)
}
 0x28f   : > { %583 = dma.vmem_to_hbm [thread:$0]  (%p1112_p10), %s1049_s7, 128, %s1047_s27, %s444_s16  }
 0x290 PF: > { %s469_s23 = sand.u32 1, %s764_s9   ;;  %p1113_p5 = scmp.ne.s32.totalorder %s1102_s22, 0 }
 0x291   : > { %p1114_p0 = scmp.ge.s32.totalorder %s776_s12, 2  ;;  %s470_s28 = scalar_lea.sflag [#allocation4], %s469_s23 }
 0x293   : > { %p594_p6 = pnand %p1114_p0, %p1113_p5 }
 0x295   : > { %759 = dma.done.wait (!%p594_p6), %s470_s28, 128  }
 0x296   : > { %761 = vsyncadd (!%p594_p6), %s470_s28, 4294967168  ;;  %p16_p13 = scmp.ge.s32.totalorder %s829_s15, 4   ;;  %s1115_s9 = smov %s768_s10 }
 0x297   : > { %s1116_s10 = smov %s772_s11  ;;  %s1117_s11 = smov %s841_s18 }
 0x298   : > { %s1118_s12 = smov %s829_s15  ;;  %18 = sbr.rel (!%p16_p13) target bundleno = 6 (0x6), region = 80 }
 0x29f   :  { %475 = vsyncpa [#allocation3], 1 }
 0x2a0   :  { %477 = vsyncpa [#allocation3 + $0x1], 1 }
 0x2a1   :  { %478 = vsyncpa [#allocation6], 1 }
 0x2a2   :  { %479 = vsyncpa [#allocation4], 1 }
 0x2a3   :  { %481 = vsyncpa [#allocation4 + $0x1], 1 }

</bundles_post_ra>
